<compile_context>
chip_gen: v5e
topology: v5e:2x2
jax: 0.10.0
libtpu: 0.0.40
codegen_flags: <defaults>
</compile_context>

<pallas_src>
import math

import jax
import jax.numpy as jnp
from jax.experimental import pallas as pl
from jax.experimental.pallas import tpu as pltpu


# ----------------------------------------------------------------------------
# Pallas kernel: one row-block (batch-groups x channels) x one spatial tile.
#   o[r, s] = sum_k Wblk[r, k] * x[k, s] + b[r]        (residual folded in Wblk)
# Rows sit on sublanes, H*W on lanes -> lane-dense loads and stores.
# ----------------------------------------------------------------------------
def _pe2d_kernel(x_ref, w_ref, b_ref, o_ref):
    # x: (row_block, tile_s)  w: (row_block, row_block)  b: (row_block, 1)
    y = jnp.dot(w_ref[...], x_ref[...], preferred_element_type=jnp.float32)
    o_ref[...] = (y + b_ref[...]).astype(o_ref.dtype)


# ----------------------------------------------------------------------------
# Tiling heuristics
# ----------------------------------------------------------------------------
def _vmem_budgets():
    """(tiling budget, scoped vmem limit) sized per TPU generation."""
    try:
        cap = pltpu.get_tpu_info().vmem_capacity_bytes
    except Exception:
        cap = 64 << 20                       # conservative (v7x-sized) default
    if cap >= (100 << 20):                   # v5e / v6e: 128 MiB physical VMEM
        return 48 << 20, 96 << 20
    return 24 << 20, 32 << 20                # v7x: 64 MiB per TensorCore


def _choose_row_block(rows, c, cap_rows):
    if rows <= cap_rows:
        return rows                          # full dim: always a legal block
    step = math.lcm(c, 8)                    # channel-group + sublane aligned
    if step >= rows:
        return rows
    return max(step, (min(cap_rows, rows) // step) * step)


def _choose_tiles(batch, c, hw, budget_bytes, itemsize,
                  cap_rows=1024, target_step_bytes=4 << 20):
    rows = batch * c
    row_block = _choose_row_block(rows, c, cap_rows)

    if hw <= 128:
        return row_block, hw                 # full spatial dim (legal block)

    # Largest multiple-of-128 spatial tile that fits the VMEM budget
    # (double-buffered in/out tiles + double-buffered resident weight/bias)
    # and keeps each step's DMA near the target size.
    resident = 2 * (row_block * row_block + row_block) * 4
    per_col = 2 * 2 * row_block * itemsize
    max_cols = max((budget_bytes - resident) // per_col, 128)
    tile_s = min((hw // 128) * 128, (max_cols // 128) * 128)
    target_cols = (target_step_bytes // (row_block * itemsize) // 128) * 128
    if target_cols >= 128:
        tile_s = min(tile_s, target_cols)
    tile_s = max(tile_s, 128)

    # Keep >= 4 grid steps when one row block covers everything, so input
    # prefetch overlaps compute and v7x's two TCs each get pipelined work.
    if pl.cdiv(rows, row_block) == 1 and hw >= 4 * 128:
        tile_s = min(tile_s, max(128, (pl.cdiv(hw, 4) // 128) * 128))
    return row_block, tile_s


# ----------------------------------------------------------------------------
# pallas_call wrapper
# ----------------------------------------------------------------------------
def _pe2d_matmul(x2, w_block, b_block, *, row_block, tile_s, vmem_limit):
    rows, hw = x2.shape
    grid = (pl.cdiv(rows, row_block), pl.cdiv(hw, tile_s))
    itemsize = jnp.dtype(x2.dtype).itemsize
    # TODO(synk): for very large C, single-buffer the constant weight/bias
    # blocks (pl.Buffered(1)) and K-tile the weight before C*C*4 bytes
    # approaches ~8 MiB (matters most on v7x's 64 MiB VMEM).
    return pl.pallas_call(
        _pe2d_kernel,
        out_shape=jax.ShapeDtypeStruct((rows, hw), x2.dtype),
        grid=grid,
        in_specs=[
            pl.BlockSpec((row_block, tile_s), lambda ri, si: (ri, si)),      # x
            pl.BlockSpec((row_block, row_block), lambda ri, si: (0, 0)),     # kron(I, W_sn + I)
            pl.BlockSpec((row_block, 1), lambda ri, si: (0, 0)),             # bias
        ],
        out_specs=pl.BlockSpec((row_block, tile_s), lambda ri, si: (ri, si)),
        compiler_params=pltpu.CompilerParams(
            dimension_semantics=("parallel", "parallel"),
            vmem_limit_bytes=vmem_limit,
        ),
        cost_estimate=pl.CostEstimate(
            flops=2 * grid[0] * grid[1] * row_block * row_block * tile_s,
            transcendentals=0,
            bytes_accessed=2 * rows * hw * itemsize
                           + (row_block * row_block + row_block) * 4,
        ),
    )(x2, w_block, b_block)


# ----------------------------------------------------------------------------
# Parameter setup (plain JAX glue): deterministic Conv2d(C, C, 1) weights
# plus spectral normalization via power iteration (PyTorch-style).
# ----------------------------------------------------------------------------
def init_params(channels, key):
    kw, kb, ku = jax.random.split(key, 3)
    bound = 1.0 / math.sqrt(channels)
    w = jax.random.uniform(kw, (channels, channels, 1, 1),
                           minval=-bound, maxval=bound, dtype=jnp.float32)
    b = jax.random.uniform(kb, (channels,),
                           minval=-bound, maxval=bound, dtype=jnp.float32)
    u = jax.random.normal(ku, (channels,), dtype=jnp.float32)
    return w, b, u


def spectral_normalize(w, u, n_power_iterations=1, eps=1e-12):
    """Spectral norm of a (C_out, C_in, 1, 1) conv weight -> (C_out, C_in)."""
    c_out = w.shape[0]
    w_mat = w.reshape(c_out, -1)                     # (C_out, C_in)
    v = None
    for _ in range(max(1, n_power_iterations)):
        v = w_mat.T @ u
        v = v / jnp.maximum(jnp.linalg.norm(v), eps)
        u = w_mat @ v
        u = u / jnp.maximum(jnp.linalg.norm(u), eps)
    sigma = u @ (w_mat @ v)
    return w_mat / sigma
    # TODO(synk): PyTorch mutates the persistent `u` buffer in training mode
    # and skips the power iteration in eval mode; this version is a purely
    # functional single iteration.


# ----------------------------------------------------------------------------
# Full forward:  x + spectral_norm(conv1x1)(x),  x in NCHW (no layout changes)
# ----------------------------------------------------------------------------
@jax.jit
def positional_encoding_2d(x_nchw, w, b, u):
    B, C, H, W = x_nchw.shape
    hw = H * W
    w_sn = spectral_normalize(w, u)                       # (C, C)
    w_eff = w_sn + jnp.eye(C, dtype=w_sn.dtype)           # fold residual: x + Wx = (W+I)x

    budget, vmem_limit = _vmem_budgets()
    itemsize = jnp.dtype(x_nchw.dtype).itemsize
    row_block, tile_s = _choose_tiles(B, C, hw, budget, itemsize)

    n_groups = row_block // C
    w_block = jnp.kron(jnp.eye(n_groups, dtype=w_eff.dtype), w_eff)
    if x_nchw.dtype == jnp.bfloat16:
        w_block = w_block.astype(jnp.bfloat16)            # keep MXU on bf16 path
    b_block = jnp.tile(b, n_groups).reshape(row_block, 1).astype(jnp.float32)

    x2 = x_nchw.reshape(B * C, hw)                        # free contiguous view
    out = _pe2d_matmul(x2, w_block, b_block,
                       row_block=row_block, tile_s=tile_s,
                       vmem_limit=vmem_limit)
    return out.reshape(B, C, H, W)


if __name__ == "__main__":
    key = jax.random.PRNGKey(0)
    kx, kp = jax.random.split(key)

    B, C, H, W = 2, 4, 16, 16
    x = jax.random.normal(kx, (B, C, H, W), dtype=jnp.float32)
    w, b, u = init_params(C, kp)

    out = positional_encoding_2d(x, w, b, u)
    jax.block_until_ready(out)

    # Correctness check against a plain-JAX reference.
    w_sn = spectral_normalize(w, u)
    ref = x + jnp.einsum("oc,bchw->bohw", w_sn, x) + b.reshape(1, C, 1, 1)
    assert out.shape == (B, C, H, W)
    assert jnp.allclose(out, ref, atol=1e-5, rtol=1e-5)

    print("KERNEL_OK")
</pallas_src>

<mosaic_0001>
module attributes {stable_mosaic.version = 11 : i64} {
  func.func @_pe2d_kernel(%arg0: i32, %arg1: i32, %arg2: memref<8x256xf32, #tpu.memory_space<vmem>>, %arg3: memref<8x8xf32, #tpu.memory_space<vmem>>, %arg4: memref<8x1xf32, #tpu.memory_space<vmem>>, %arg5: memref<8x256xf32, #tpu.memory_space<vmem>>) attributes {dimension_semantics = [#tpu.dimension_semantics<parallel>, #tpu.dimension_semantics<parallel>], iteration_bounds = array<i64: 1, 1>, scalar_prefetch = 0 : i64, scratch_operands = 0 : i64, tpu.core_type = #tpu.core_type<tc>, window_params = [{transform_indices = @transform_0, window_bounds = array<i64: 8, 256>}, {pipeline_mode = #tpu.pipeline_mode<synchronous>, transform_indices = @transform_1, window_bounds = array<i64: 8, 8>}, {pipeline_mode = #tpu.pipeline_mode<synchronous>, transform_indices = @transform_2, window_bounds = array<i64: 8, 1>}, {transform_indices = @transform_3, window_bounds = array<i64: 8, 256>}]} {
    %c0 = arith.constant 0 : index
    %c0_0 = arith.constant 0 : index
    %0 = vector.load %arg3[%c0, %c0_0] : memref<8x8xf32, #tpu.memory_space<vmem>>, vector<8x8xf32>
    %c0_1 = arith.constant 0 : index
    %c0_2 = arith.constant 0 : index
    %1 = vector.load %arg2[%c0_1, %c0_2] : memref<8x256xf32, #tpu.memory_space<vmem>>, vector<8x256xf32>
    %cst = arith.constant dense<0.000000e+00> : vector<8x256xf32>
    %2 = tpu.matmul %0, %1, %cst {dimension_numbers = #tpu.dot_dimension_numbers<[1], [0], [0], [1], [0, 0, 1, 1], [], []>} : vector<8x8xf32>, vector<8x256xf32>, vector<8x256xf32> -> vector<8x256xf32>
    %c0_3 = arith.constant 0 : index
    %c0_4 = arith.constant 0 : index
    %3 = vector.load %arg4[%c0_3, %c0_4] : memref<8x1xf32, #tpu.memory_space<vmem>>, vector<8x1xf32>
    %4 = vector.broadcast %3 : vector<8x1xf32> to vector<8x256xf32>
    %5 = arith.addf %2, %4 : vector<8x256xf32>
    %c0_5 = arith.constant 0 : index
    %c0_6 = arith.constant 0 : index
    %6 = vector.load %arg5[%c0_5, %c0_6] : memref<8x256xf32, #tpu.memory_space<vmem>>, vector<8x256xf32>
    tpu.vector_store %arg5[%c0_5, %c0_6], %5 {strides = array<i32>} : memref<8x256xf32, #tpu.memory_space<vmem>>, vector<8x256xf32>,
    return
  }
  func.func @transform_0(%arg0: i32, %arg1: i32) -> (i32, i32) {
    %c0_i32 = arith.constant 0 : i32
    return %arg0, %arg1 : i32, i32
  }
  func.func @transform_1(%arg0: i32, %arg1: i32) -> (i32, i32) {
    %c0_i32 = arith.constant 0 : i32
    %c0_i32_0 = arith.constant 0 : i32
    %c0_i32_1 = arith.constant 0 : i32
    return %c0_i32, %c0_i32_0 : i32, i32
  }
  func.func @transform_2(%arg0: i32, %arg1: i32) -> (i32, i32) {
    %c0_i32 = arith.constant 0 : i32
    %c0_i32_0 = arith.constant 0 : i32
    %c0_i32_1 = arith.constant 0 : i32
    return %c0_i32, %c0_i32_0 : i32, i32
  }
  func.func @transform_3(%arg0: i32, %arg1: i32) -> (i32, i32) {
    %c0_i32 = arith.constant 0 : i32
    return %arg0, %arg1 : i32, i32
  }
}

</mosaic_0001>

<bundles_post_ra>
// kernel: tile.8
= control target key start
LH: loop header
LB: loop body
LE: loop exit
PB: predicated region body
PF: predicated region fallthrough
CT: control target
= control target key end

     0   :  { %s22_s0 = inlined_call_operand.vmem [shape: f32[4], index: 0, kind: input, shape index: {}]   ;;  %s23_s1 = inlined_call_operand.vmem [shape: f32[2,4], index: 1, kind: output, shape index: {}]  }
   0x1   :  { %v4_v0 = vld [vmem:[%s22_s0] ss:$0 sm:$0xff] }
   0x2   :  { %5 = vst [vmem:[%s23_s1] sm:$0x3] %v4_v0 }

// kernel: tile.0
= control target key start
LH: loop header
LB: loop body
LE: loop exit
PB: predicated region body
PF: predicated region fallthrough
CT: control target
= control target key end

     0   :  { %s34_s8 = smov 125   ;;  %s35_s9 = smov 126   ;;  %vm7_vm0 = vcmask 7168   ;;  %s61_s0 = inlined_call_operand.vmem [shape: f32[2,4], index: 0, kind: input, shape index: {}]   ;;  %s62_s1 = inlined_call_operand.vmem [shape: f32[8,1], index: 1, kind: output, shape index: {}]  }
   0x1   :  { %v4_v0 = vld [vmem:[%s61_s0] sm:$0x3]  ;;  %s33_s0 = smov 127  }
   0x2   :  { %5 = vst [vmem:[#allocation0] sm:$0x3] %v4_v0 }
   0x9   :  { %v9_v1 = vld [vmem:[#allocation0] sm:$0x3]  }
   0xa   :  { %v21_v2 = vld [vmem:[#allocation0] sm:$0x3]   ;;  %10 = vrot.lane.b32.xlu0 %v9_v1, %s33_s0 }
   0xb   :  { %22 = vrot.lane.b32.xlu1 %v21_v2, %s34_s8  ;;  %v15_v3 = vld [vmem:[#allocation0] sm:$0x3]  }
   0xc   :  { %v6_v4 = vld [vmem:[#allocation0] sm:$0x3]  }
   0xd   :  { %8 = vst.msk [vmem:[%s62_s1] ss:$4 sm:$0x3] %vm7_vm0, %v6_v4  }
  0x12   :  { %16 = vrot.lane.b32.xlu0 %v15_v3, %s35_s9 }
  0x7c   :  { %v11_v5 = vpop.permute.xlu0 %10  }
  0x7d   :  { %v23_v6 = vpop.permute.xlu1 %22   ;;  %27 = vst.msk [vmem:[%s62_s1 + $0x1] ss:$4 sm:$0x3] %vm7_vm0, %v11_v5  }
  0x7e   :  { %29 = vst.msk [vmem:[%s62_s1 + $0x3] ss:$4 sm:$0x3] %vm7_vm0, %v23_v6  }
  0x84   :  { %v17_v7 = vpop.permute.xlu0 %16  }
  0x85   :  { %28 = vst.msk [vmem:[%s62_s1 + $0x2] ss:$4 sm:$0x3] %vm7_vm0, %v17_v7  }

// kernel: positional_encoding_2d.1
= control target key start
LH: loop header
LB: loop body
LE: loop exit
PB: predicated region body
PF: predicated region fallthrough
CT: control target
= control target key end

     0   :  { %vm23_vm0 = vcmask 64512   ;;  %v77_v3 = vmov 0   ;;  %s116_s0 = inlined_call_operand.vmem [shape: f32[8,256], index: 0, kind: input, shape index: {}]   ;;  %s117_s1 = inlined_call_operand.vmem [shape: f32[8,8], index: 1, kind: input, shape index: {}]   ;;  %s118_s2 = inlined_call_operand.vmem [shape: f32[8,1], index: 2, kind: input, shape index: {}]   ;;  %s119_s3 = inlined_call_operand.vmem [shape: f32[8,256], index: 3, kind: output, shape index: {}]  }
   0x1   :  { %v15_v0 = vld [vmem:[%s116_s0] sm:$0xff]  ;;  %v16_v1 = vld [vmem:[%s116_s0 + $0x8] sm:$0xff]  ;;  %76 = vset.pattern.permute.xlu0 %v77_v3 }
   0x2   :  { %v14_v2 = vld [vmem:[%s117_s1] sm:$0xff]  ;;  %42 = vmatpush.msra.mxu0 %v15_v0  ;;  %62 = vmatpush.msra.mxu1 %v16_v1 }
   0x3   :  { %v17_v4 = vld [vmem:[%s118_s2] sm:$0xff]  ;;  %73 = vmatmul.msk.f32.vlgmr.msra.gmra.mxu0 %vm23_vm0, %v14_v2  ;;  %74 = vmatmul.msk.f32.vlgmr.msra.gmra.mxu1 %vm23_vm0, %v14_v2 }
   0x4   :  { %20 = vperm.xlu0 %76, %v17_v4  }
  0x76   :  { %v21_v5 = vpop.permute.xlu0 %20 }
  0x80   :  { %v44_v6 = vpop.f32.mrf.mxu0  ;;  %v64_v7 = vpop.f32.mrf.mxu1 }
  0x81   :  { %v45_v8 = vadd.f32 %v44_v6, %v21_v5  ;;  %v65_v9 = vadd.f32 %v64_v7, %v21_v5 }
  0x83   :  { %67 = vst [vmem:[%s119_s3] sm:$0xff] %v45_v8 }
  0x84   :  { %68 = vst [vmem:[%s119_s3 + $0x8] sm:$0xff] %v65_v9 }

</bundles_post_ra>
